<compile_context>
chip_gen: v6e
topology: v6e:2x2x1
jax: 0.10.0
libtpu: 0.0.40
codegen_flags: <defaults>
</compile_context>

<pallas_src>
import functools
import math

import jax
import jax.numpy as jnp
from jax.experimental import pallas as pl
from jax.experimental.pallas import tpu as pltpu


D_MODEL = 32
VOCAB = 128


# --------------------------- Pallas kernel ---------------------------

def _embedding_kernel(ids_ref, table_ref, o_ref, *, scale):
    # ids_ref:   (T, 1)  int32    -- all B*S token ids, flattened
    # table_ref: (V, D)  float32  -- full embedding table, VMEM-resident
    # o_ref:     (T, D)  float32
    ids = ids_ref[...]                                   # (T, 1) int32
    t = ids.shape[0]
    v = table_ref.shape[0]
    # Gather-as-matmul with the sqrt(d_model) scale folded into the one-hot:
    # each output row has exactly one nonzero term, so this is numerically
    # identical to (lookup * scale) but needs no post-matmul VPU multiply.
    iota = jax.lax.broadcasted_iota(jnp.int32, (t, v), 1)
    onehot = jnp.where(ids == iota, scale, 0.0).astype(jnp.float32)
    o_ref[...] = jnp.dot(
        onehot, table_ref[...], preferred_element_type=jnp.float32
    ).astype(o_ref.dtype)


# --------------------------- wrapper ---------------------------

def embeddings(ids, table):
    """ids: (B, S) integer token ids; table: (V, D) float32. Returns (B, S, D)."""
    B, S = ids.shape
    V, D = table.shape
    scale = float(math.sqrt(D))
    T = B * S
    ids2 = ids.astype(jnp.int32).reshape(T, 1)
    out = pl.pallas_call(
        functools.partial(_embedding_kernel, scale=scale),
        # No grid: single invocation, all operands fully VMEM-resident.
        out_shape=jax.ShapeDtypeStruct((T, D), table.dtype),
    )(ids2, table)
    return out.reshape(B, S, D)
    # TODO(synk): for production vocab sizes (table > VMEM / scoped-VMEM limit, e.g.
    # 32k x 1024 f32 on v7x's 64 MiB VMEM), switch to a scalar-prefetch row-gather
    # (PrefetchScalarGridSpec with ids in SMEM + pl.Element(1) row BlockSpec, or a
    # manual make_async_copy gather from a memory_space=pl.ANY table) instead of the
    # O(B*S*V*D) one-hot matmul.


# --------------------------- pure-JAX reference ---------------------------

def embeddings_ref(ids, table):
    return jnp.take(table, ids, axis=0) * math.sqrt(table.shape[1])


# --------------------------- main ---------------------------

if __name__ == "__main__":
    key = jax.random.PRNGKey(0)
    k_ids, k_tab = jax.random.split(key)

    B, S = 2, 8
    ids = jax.random.randint(k_ids, (B, S), 0, VOCAB, dtype=jnp.int32)
    table = 0.02 * jax.random.normal(k_tab, (VOCAB, D_MODEL), jnp.float32)

    out = embeddings(ids, table)
    out = jax.block_until_ready(out)

    ref = embeddings_ref(ids, table)
    assert out.shape == (B, S, D_MODEL)
    assert bool(jnp.all(jnp.isfinite(out)))
    assert jnp.allclose(out, ref, atol=1e-5, rtol=1e-5)

    print("KERNEL_OK")
</pallas_src>

<mosaic_0001>
module attributes {stable_mosaic.version = 11 : i64} {
  func.func @_embedding_kernel(%arg0: memref<16x1xi32, #tpu.memory_space<vmem>>, %arg1: memref<128x32xf32, #tpu.memory_space<vmem>>, %arg2: memref<16x32xf32, #tpu.memory_space<vmem>>) attributes {dimension_semantics = [], scalar_prefetch = 0 : i64, scratch_operands = 0 : i64, tpu.core_type = #tpu.core_type<tc>} {
    %c0 = arith.constant 0 : index
    %c0_0 = arith.constant 0 : index
    %0 = vector.load %arg0[%c0, %c0_0] : memref<16x1xi32, #tpu.memory_space<vmem>>, vector<16x1xi32>
    %1 = tpu.iota {dimensions = array<i32: 1>} : vector<16x128xi32>
    %2 = vector.broadcast %0 : vector<16x1xi32> to vector<16x128xi32>
    %3 = arith.cmpi eq, %2, %1 : vector<16x128xi32>
    %cst = arith.constant 5.65685415 : f32
    %cst_1 = arith.constant 0.000000e+00 : f32
    %4 = vector.broadcast %cst : f32 to vector<16x128xf32>
    %5 = vector.broadcast %cst_1 : f32 to vector<16x128xf32>
    %6 = arith.select %3, %4, %5 : vector<16x128xi1>, vector<16x128xf32>
    %c0_2 = arith.constant 0 : index
    %c0_3 = arith.constant 0 : index
    %7 = vector.load %arg1[%c0_2, %c0_3] : memref<128x32xf32, #tpu.memory_space<vmem>>, vector<128x32xf32>
    %cst_4 = arith.constant dense<0.000000e+00> : vector<16x32xf32>
    %8 = tpu.matmul %6, %7, %cst_4 {dimension_numbers = #tpu.dot_dimension_numbers<[1], [0], [0], [1], [0, 0, 1, 1], [], []>} : vector<16x128xf32>, vector<128x32xf32>, vector<16x32xf32> -> vector<16x32xf32>
    %c0_5 = arith.constant 0 : index
    %c0_6 = arith.constant 0 : index
    %9 = vector.load %arg2[%c0_5, %c0_6] : memref<16x32xf32, #tpu.memory_space<vmem>>, vector<16x32xf32>
    tpu.vector_store %arg2[%c0_5, %c0_6], %8 {strides = array<i32>} : memref<16x32xf32, #tpu.memory_space<vmem>>, vector<16x32xf32>,
    return
  }
}

</mosaic_0001>

<bundles_post_ra>
// kernel: tpu_custom_call.1
= control target key start
LH: loop header
LB: loop body
LE: loop exit
PB: predicated region body
PF: predicated region fallthrough
CT: control target
= control target key end

     0   :  { %v219_v2 = vmov 0   ;;  %s296_s0 = inlined_call_operand.vmem [shape: s32[16,1], index: 0, kind: input, shape index: {}]   ;;  %s297_s1 = inlined_call_operand.vmem [shape: f32[128,32], index: 1, kind: input, shape index: {}]   ;;  %s298_s2 = inlined_call_operand.hbm [shape: f32[16,32], index: 2, kind: output, shape index: {}]  }
   0x1   :  { %v12_v0 = vld [vmem:[%s296_s0] sm:$0xff]  ;;  %v41_v1 = vld [vmem:[%s297_s1 + $0x78] sm:$0xff]  ;;  %196 = vset.pattern.permute.xlu0 %v219_v2  ;;  %v40_v3 = vld [vmem:[%s297_s1 + $0x70] sm:$0xff] }
   0x2   :  { %156 = vmatprep.subr.mxu0 %v41_v1  ;;  %17 = vperm.xlu0 %196, %v12_v0   ;;  %v39_v4 = vld [vmem:[%s297_s1 + $0x68] sm:$0xff]  ;;  %v38_v6 = vld [vmem:[%s297_s1 + $0x60] sm:$0xff]  ;;  %v37_v7 = vld [vmem:[%s297_s1 + $0x58] sm:$0xff] }
   0x3   :  { %157 = vmatpush3.msra.mxu0 %v41_v1  ;;  %v13_v5 = vld [vmem:[%s296_s0 + $0x8] sm:$0xff] }
   0x4   :  { %158 = vmatprep.subr.mxu0 %v40_v3 }
   0x5   :  { %159 = vmatpush3.msra.mxu0 %v40_v3 }
   0x6   :  { %160 = vmatprep.subr.mxu0 %v39_v4  ;;  %20 = vperm.xlu0 %196, %v13_v5  }
   0x7   :  { %161 = vmatpush3.msra.mxu0 %v39_v4 }
   0x8   :  { %7 = vsyncpa [#allocation3], 0  ;;  %162 = vmatprep.subr.mxu0 %v38_v6  ;;  %v36_v8 = vld [vmem:[%s297_s1 + $0x50] sm:$0xff]  ;;  %v35_v9 = vld [vmem:[%s297_s1 + $0x48] sm:$0xff]  ;;  %v14_v19 = vlaneseq  ;;  %v220_v22 = vmov 5.656854  }
   0x9   :  { %163 = vmatpush3.msra.mxu0 %v38_v6  ;;  %v34_v10 = vld [vmem:[%s297_s1 + $0x40] sm:$0xff]  ;;  %v33_v11 = vld [vmem:[%s297_s1 + $0x38] sm:$0xff]  ;;  %v32_v12 = vld [vmem:[%s297_s1 + $0x30] sm:$0xff]  ;;  %s221_s16 = smov [#allocation2]   ;;  %vm117_vm2 = vcmask 261120  }
   0xa   :  { %164 = vmatprep.subr.mxu0 %v37_v7  ;;  %v31_v13 = vld [vmem:[%s297_s1 + $0x28] sm:$0xff]  ;;  %v30_v14 = vld [vmem:[%s297_s1 + $0x20] sm:$0xff]  ;;  %v29_v15 = vld [vmem:[%s297_s1 + $0x18] sm:$0xff]  ;;  %v15_v20 = vand.u32 127, %v14_v19  ;;  %s125_s17 = sshll.u32 %s221_s16, 4  ;;  %s126_s17 = int_to_ptr.vmem [resolvable:$true] %s125_s17 }
   0xb   :  { %165 = vmatpush3.msra.mxu0 %v37_v7  ;;  %v28_v16 = vld [vmem:[%s297_s1 + $0x10] sm:$0xff]  ;;  %v27_v17 = vld [vmem:[%s297_s1 + $0x8] sm:$0xff]  ;;  %v26_v18 = vld [vmem:[%s297_s1] sm:$0xff]  ;;  %s197_s1 = scalar_lea.vmem %s126_s17, 256  ;;  %p202_p1 = scmp.lt.s32.totalorder %s126_s17, %s126_s17 }
   0xc   :  { %166 = vmatprep.subr.mxu0 %v36_v8  ;;  %p198_p0 = scmp.ne.s32.totalorder %s126_s17, %s197_s1  ;;  %p203_p2 = scmp.lt.s32.totalorder %s197_s1, %s197_s1 }
   0xd   :  { %167 = vmatpush3.msra.mxu0 %v36_v8 }
   0xe   :  { %168 = vmatprep.subr.mxu0 %v35_v9  ;;  %p204_p3 = por %p203_p2, %p202_p1 }
   0xf   :  { %169 = vmatpush3.msra.mxu0 %v35_v9 }
  0x10   :  { %170 = vmatprep.subr.mxu0 %v34_v10  ;;  %p205_p4 = pnand %p204_p3, %p198_p0 }
  0x11   :  { %171 = vmatpush3.msra.mxu0 %v34_v10 }
  0x12   :  { %172 = vmatprep.subr.mxu0 %v33_v11 }
  0x13   :  { %173 = vmatpush3.msra.mxu0 %v33_v11 }
  0x14   :  { %174 = vmatprep.subr.mxu0 %v32_v12 }
  0x15   :  { %175 = vmatpush3.msra.mxu0 %v32_v12 }
  0x16   :  { %176 = vmatprep.subr.mxu0 %v31_v13 }
  0x17   :  { %177 = vmatpush3.msra.mxu0 %v31_v13 }
  0x18   :  { %178 = vmatprep.subr.mxu0 %v30_v14 }
  0x19   :  { %179 = vmatpush3.msra.mxu0 %v30_v14 }
  0x1a   :  { %180 = vmatprep.subr.mxu0 %v29_v15 }
  0x1b   :  { %181 = vmatpush3.msra.mxu0 %v29_v15 }
  0x1c   :  { %182 = vmatprep.subr.mxu0 %v28_v16 }
  0x1d   :  { %183 = vmatpush3.msra.mxu0 %v28_v16 }
  0x1e   :  { %184 = vmatprep.subr.mxu0 %v27_v17 }
  0x1f   :  { %185 = vmatpush3.msra.mxu0 %v27_v17 }
  0x20   :  { %186 = vmatprep.subr.mxu0 %v26_v18 }
  0x21   :  { %187 = vmatpush3.msra.mxu0 %v26_v18 }
  0x7d   :  { %v18_v21 = vpop.permute.xlu0 %17 }
  0x7e   :  { %vm22_vm0 = vcmp.eq.s32.totalorder %v18_v21, %v15_v20 }
  0x7f   :  { %188 = vmatprep.mubr.msk.f32.mxu0 %vm22_vm0, %v220_v22 }
  0x81   :  { %v21_v23 = vpop.permute.xlu0 %20 }
  0x82   :  { %vm23_vm1 = vcmp.eq.s32.totalorder %v21_v23, %v15_v20 }
  0x83   :  { %189 = vmatmul.mubr.msk.f32.vlgmr.msra.gmra.mxu0 %vm23_vm1, %v220_v22 }
 0x143   :  { %v190_v24 = vpop.f32.mrf.mxu0 }
 0x144   :  { %119 = vst.msk [vmem:[#allocation2 + $0x8] sm:$0xff] %vm117_vm2, %v190_v24 }
 0x145   :  { %v108_v25 = vpop.f32.mrf.mxu0 }
 0x146   :  { %118 = vst.msk [vmem:[#allocation2] sm:$0xff] %vm117_vm2, %v108_v25 }
 0x147   :  { %208 = shalt.err (!%p205_p4)
}
 0x148   :  { %s222_s18 = smov 128   ;;  %s223_s19 = smov 8  }
 0x149   :  { %131 = dma.vmem_to_hbm [thread:$0]  %s126_s17, 256, %s298_s2, [#allocation3], %s222_s18, %s222_s18, %s223_s19  }
 0x14a   :  { %217 = dma.done.wait [#allocation3], 256  }
 0x14b   :  { %218 = vsyncadd [#allocation3], 4294967040 }
 0x14c   :  { %135 = vsyncpa [#allocation3], 1 }

</bundles_post_ra>
